<compile_context>
chip_gen: v5e
topology: v5e:2x2
jax: 0.10.0
libtpu: 0.0.40
codegen_flags: <defaults>
</compile_context>

<pallas_src>
import functools

import jax
import jax.numpy as jnp
from jax.experimental import pallas as pl
from jax.experimental.pallas import tpu as pltpu


def _round_up(n, m):
    return ((n + m - 1) // m) * m


def _mgmlp_kernel(x_ref,
                  w1_ref, b1_ref,
                  w2_ref, b2_ref,
                  wh_ref, bh_ref,
                  out_ref, *, n_components):
    K = n_components
    cd = w1_ref.dtype  # compute dtype of MXU inputs (f32 or bf16); accumulation is f32

    x = x_ref[...]

    # FeedForward: Linear -> ReLU -> (Dropout = id in eval) -> Linear -> ReLU -> (Dropout = id)
    h1 = jnp.dot(x, w1_ref[...], preferred_element_type=jnp.float32) + b1_ref[...]
    h1 = jnp.maximum(h1, 0.0)
    h2 = jnp.dot(h1.astype(cd), w2_ref[...], preferred_element_type=jnp.float32) + b2_ref[...]
    h2 = jnp.maximum(h2, 0.0)

    # Fused head: [ pi_logits | mu | log_sig | zero-pad ] in one lane-dense slab.
    head = jnp.dot(h2.astype(cd), wh_ref[...], preferred_element_type=jnp.float32) + bh_ref[...]

    # Softmax over the first K lanes only; all other lanes pass through untouched.
    col = jax.lax.broadcasted_iota(jnp.int32, head.shape, dimension=1)
    is_pi = col < K
    masked_logits = jnp.where(is_pi, head, -jnp.inf)
    m = jnp.max(masked_logits, axis=-1, keepdims=True)
    # exp(0) = 1 on non-pi lanes (avoids overflow), then zero them out before the sum.
    e = jnp.exp(jnp.where(is_pi, head, m) - m)
    e = jnp.where(is_pi, e, 0.0)
    pi = e / jnp.sum(e, axis=-1, keepdims=True)   # exact normalization

    # Single unmasked, lane-dense store of the whole slab.
    out_ref[...] = jnp.where(is_pi, pi, head).astype(out_ref.dtype)


def prepare_params(params, n_components, output_channel=1, compute_dtype=jnp.float32):
    """One-time parameter prep (hoisted out of the per-call wrapper).

    Fuses the three head projections into one zero-padded, lane-dense weight/bias and
    casts matmul inputs to `compute_dtype` (biases stay f32, added post-accumulation).
    """
    K = n_components
    KC = n_components * output_channel
    head_w = K + 2 * KC
    head_pad = _round_up(max(head_w, 128), 128)   # keep 128; MXU pads N internally

    w_head = jnp.concatenate([params["w_pi"], params["w_mu"], params["w_ls"]], axis=1)
    b_head = jnp.concatenate([params["b_pi"], params["b_mu"], params["b_ls"]], axis=1)
    w_head = jnp.pad(w_head, ((0, 0), (0, head_pad - head_w)))
    b_head = jnp.pad(b_head, ((0, 0), (0, head_pad - head_w)))

    return dict(
        w1=params["w1"].astype(compute_dtype), b1=params["b1"].astype(jnp.float32),
        w2=params["w2"].astype(compute_dtype), b2=params["b2"].astype(jnp.float32),
        w_head=w_head.astype(compute_dtype), b_head=b_head.astype(jnp.float32),
    )


def mixture_gaussian_mlp(x, prepared, n_components, output_channel=1, *,
                         tile_b=4096, out_dtype=jnp.float32, return_slab=False):
    """x: (B, input_channel). Returns [pi (B,K), mu (B,K*C), log_sig (B,K*C)].

    If return_slab=True, returns the padded (B, head_pad) slab so a downstream consumer
    (e.g. an NLL loss kernel) can fuse the pi/mu/log_sig slicing itself.
    """
    B, in_ch = x.shape
    w1, b1 = prepared["w1"], prepared["b1"]
    w2, b2 = prepared["w2"], prepared["b2"]
    w_head, b_head = prepared["w_head"], prepared["b_head"]
    h1 = w1.shape[1]
    h2 = w2.shape[1]
    head_pad = w_head.shape[1]
    K = n_components
    KC = n_components * output_channel

    x = x.astype(w1.dtype)

    # --- batch tiling ---------------------------------------------------------------
    # Large tiles: per-tile VMEM footprint is small (x/out tiles + tiny weights), so
    # tile_b up to 8192 double-buffered stays well within the 32 MiB scoped VMEM limit
    # (safe for v7x's 64 MiB physical VMEM too). Tile is a multiple of 8 sublanes.
    tile_b = min(tile_b, 8192, _round_up(B, 8))
    tile_b = max(8, _round_up(tile_b, 8))
    # Guarantee >= 2 grid steps when possible so the "parallel" batch axis can actually
    # be sharded across the two TensorCores on v7x (near-zero cost on v5e/v6e).
    if B >= 16 and tile_b >= B:
        tile_b = _round_up(pl.cdiv(B, 2), 8)
    nb = pl.cdiv(B, tile_b)

    x_spec = pl.BlockSpec((tile_b, in_ch), lambda i: (i, 0))
    out_spec = pl.BlockSpec((tile_b, head_pad), lambda i: (i, 0))
    # Weights / biases: constant block index -> loaded once, VMEM-resident across the grid.
    const = lambda shape: pl.BlockSpec(shape, lambda i: (0,) * len(shape))

    itemsize = jnp.dtype(w1.dtype).itemsize
    flops = 2 * B * (in_ch * h1 + h1 * h2 + h2 * head_pad)
    bytes_accessed = (itemsize * (x.size + w1.size + w2.size + w_head.size)
                      + 4 * (b1.size + b2.size + b_head.size)
                      + jnp.dtype(out_dtype).itemsize * B * head_pad)
    cost = pl.CostEstimate(flops=flops,
                           transcendentals=B * (head_pad + 1),  # exp on all lanes + 1 recip/row
                           bytes_accessed=bytes_accessed)

    kernel = functools.partial(_mgmlp_kernel, n_components=K)

    slab = pl.pallas_call(
        kernel,
        out_shape=jax.ShapeDtypeStruct((B, head_pad), out_dtype),
        grid=(nb,),
        in_specs=[x_spec,
                  const(w1.shape), const(b1.shape),
                  const(w2.shape), const(b2.shape),
                  const(w_head.shape), const(b_head.shape)],
        out_specs=out_spec,
        compiler_params=pltpu.CompilerParams(
            dimension_semantics=("parallel",),   # shard batch tiles across TCs on v7x
            vmem_limit_bytes=32 << 20),
        cost_estimate=cost,
    )(x, w1, b1, w2, b2, w_head, b_head)

    if return_slab:
        return slab
    pi = slab[:, :K]
    mu = slab[:, K:K + KC]
    log_sig = slab[:, K + KC:K + 2 * KC]
    return [pi, mu, log_sig]


def init_params(key, input_channel, hiddens, output_channel, n_components):
    """Deterministic synthetic init. Linear weights stored as (in, out)."""
    ks = jax.random.split(key, 10)
    h1, h2 = hiddens

    def lin(kw, kb, fan_in, fan_out):
        bound = 1.0 / jnp.sqrt(fan_in)
        w = jax.random.uniform(kw, (fan_in, fan_out), jnp.float32, -bound, bound)
        b = jax.random.uniform(kb, (1, fan_out), jnp.float32, -bound, bound)
        return w, b

    w1, b1 = lin(ks[0], ks[1], input_channel, h1)
    w2, b2 = lin(ks[2], ks[3], h1, h2)
    w_pi, b_pi = lin(ks[4], ks[5], h2, n_components)
    w_mu, b_mu = lin(ks[6], ks[7], h2, n_components * output_channel)
    w_ls, b_ls = lin(ks[8], ks[9], h2, n_components * output_channel)
    return dict(w1=w1, b1=b1, w2=w2, b2=b2,
                w_pi=w_pi, b_pi=b_pi, w_mu=w_mu, b_mu=b_mu, w_ls=w_ls, b_ls=b_ls)


if __name__ == "__main__":
    key = jax.random.PRNGKey(0)
    k_x, k_p = jax.random.split(key)

    # Small shapes consistent with the module: MLP path (use_image=False)
    batch = 64
    input_channel = 16
    hiddens = [64, 32]
    output_channel = 1
    n_components = 5

    x = jax.random.normal(k_x, (batch, input_channel), jnp.float32)
    params = init_params(k_p, input_channel, hiddens, output_channel, n_components)

    # One-time parameter prep (head fusion hoisted out of the per-call path).
    prepared_f32 = prepare_params(params, n_components, output_channel, jnp.float32)

    # Whole forward (kernel + slab slicing) under one jit so XLA fuses the slicing.
    @functools.partial(jax.jit, static_argnums=(2, 3))
    def forward(xx, prepared, K, C):
        # tile_b=16 exercises the batch grid (grid=(4,)) at this small demo size;
        # at real batch sizes the 4096-row default applies.
        return mixture_gaussian_mlp(xx, prepared, K, C, tile_b=16)

    pi, mu, log_sig = forward(x, prepared_f32, n_components, output_channel)
    jax.block_until_ready((pi, mu, log_sig))

    # Reference check in plain JAX (same math, eval-mode dropout == identity).
    h = jnp.maximum(x @ params["w1"] + params["b1"], 0.0)
    h = jnp.maximum(h @ params["w2"] + params["b2"], 0.0)
    pi_ref = jax.nn.softmax(h @ params["w_pi"] + params["b_pi"], axis=-1)
    mu_ref = h @ params["w_mu"] + params["b_mu"]
    ls_ref = h @ params["w_ls"] + params["b_ls"]

    assert pi.shape == (batch, n_components)
    assert mu.shape == (batch, n_components * output_channel)
    assert log_sig.shape == (batch, n_components * output_channel)
    assert jnp.allclose(pi, pi_ref, atol=1e-5, rtol=1e-5), "pi mismatch"
    assert jnp.allclose(mu, mu_ref, atol=1e-5, rtol=1e-5), "mu mismatch"
    assert jnp.allclose(log_sig, ls_ref, atol=1e-5, rtol=1e-5), "log_sig mismatch"

    # bf16 matmul-input path (per v5e feedback): bf16 x/weights, f32 accumulation.
    prepared_bf16 = prepare_params(params, n_components, output_channel, jnp.bfloat16)
    pi_b, mu_b, ls_b = forward(x, prepared_bf16, n_components, output_channel)
    jax.block_until_ready((pi_b, mu_b, ls_b))
    assert jnp.allclose(pi_b, pi_ref, atol=5e-2, rtol=5e-2), "pi (bf16) mismatch"
    assert jnp.allclose(mu_b, mu_ref, atol=5e-2, rtol=5e-2), "mu (bf16) mismatch"
    assert jnp.allclose(ls_b, ls_ref, atol=5e-2, rtol=5e-2), "log_sig (bf16) mismatch"

    print("KERNEL_OK")
</pallas_src>

<mosaic_0001>
module attributes {stable_mosaic.version = 11 : i64} {
  func.func @_mgmlp_kernel(%arg0: i32, %arg1: memref<16x16xf32, #tpu.memory_space<vmem>>, %arg2: memref<16x64xf32, #tpu.memory_space<vmem>>, %arg3: memref<1x64xf32, #tpu.memory_space<vmem>>, %arg4: memref<64x32xf32, #tpu.memory_space<vmem>>, %arg5: memref<1x32xf32, #tpu.memory_space<vmem>>, %arg6: memref<32x128xf32, #tpu.memory_space<vmem>>, %arg7: memref<1x128xf32, #tpu.memory_space<vmem>>, %arg8: memref<16x128xf32, #tpu.memory_space<vmem>>) attributes {dimension_semantics = [#tpu.dimension_semantics<parallel>], iteration_bounds = array<i64: 4>, scalar_prefetch = 0 : i64, scratch_operands = 0 : i64, tpu.core_type = #tpu.core_type<tc>, window_params = [{transform_indices = @transform_0, window_bounds = array<i64: 16, 16>}, {pipeline_mode = #tpu.pipeline_mode<synchronous>, transform_indices = @transform_1, window_bounds = array<i64: 16, 64>}, {pipeline_mode = #tpu.pipeline_mode<synchronous>, transform_indices = @transform_2, window_bounds = array<i64: 1, 64>}, {pipeline_mode = #tpu.pipeline_mode<synchronous>, transform_indices = @transform_3, window_bounds = array<i64: 64, 32>}, {pipeline_mode = #tpu.pipeline_mode<synchronous>, transform_indices = @transform_4, window_bounds = array<i64: 1, 32>}, {pipeline_mode = #tpu.pipeline_mode<synchronous>, transform_indices = @transform_5, window_bounds = array<i64: 32, 128>}, {pipeline_mode = #tpu.pipeline_mode<synchronous>, transform_indices = @transform_6, window_bounds = array<i64: 1, 128>}, {transform_indices = @transform_7, window_bounds = array<i64: 16, 128>}]} {
    %c0 = arith.constant 0 : index
    %c0_0 = arith.constant 0 : index
    %0 = vector.load %arg1[%c0, %c0_0] : memref<16x16xf32, #tpu.memory_space<vmem>>, vector<16x16xf32>
    %c0_1 = arith.constant 0 : index
    %c0_2 = arith.constant 0 : index
    %1 = vector.load %arg2[%c0_1, %c0_2] : memref<16x64xf32, #tpu.memory_space<vmem>>, vector<16x64xf32>
    %cst = arith.constant dense<0.000000e+00> : vector<16x64xf32>
    %2 = tpu.matmul %0, %1, %cst {dimension_numbers = #tpu.dot_dimension_numbers<[1], [0], [0], [1], [0, 0, 1, 1], [], []>} : vector<16x16xf32>, vector<16x64xf32>, vector<16x64xf32> -> vector<16x64xf32>
    %c0_3 = arith.constant 0 : index
    %c0_4 = arith.constant 0 : index
    %3 = vector.load %arg3[%c0_3, %c0_4] : memref<1x64xf32, #tpu.memory_space<vmem>>, vector<1x64xf32>
    %4 = vector.broadcast %3 : vector<1x64xf32> to vector<16x64xf32>
    %5 = arith.addf %2, %4 : vector<16x64xf32>
    %cst_5 = arith.constant 0.000000e+00 : f32
    %6 = vector.broadcast %cst_5 : f32 to vector<16x64xf32>
    %7 = arith.maximumf %5, %6 : vector<16x64xf32>
    %c0_6 = arith.constant 0 : index
    %c0_7 = arith.constant 0 : index
    %8 = vector.load %arg4[%c0_6, %c0_7] : memref<64x32xf32, #tpu.memory_space<vmem>>, vector<64x32xf32>
    %cst_8 = arith.constant dense<0.000000e+00> : vector<16x32xf32>
    %9 = tpu.matmul %7, %8, %cst_8 {dimension_numbers = #tpu.dot_dimension_numbers<[1], [0], [0], [1], [0, 0, 1, 1], [], []>} : vector<16x64xf32>, vector<64x32xf32>, vector<16x32xf32> -> vector<16x32xf32>
    %c0_9 = arith.constant 0 : index
    %c0_10 = arith.constant 0 : index
    %10 = vector.load %arg5[%c0_9, %c0_10] : memref<1x32xf32, #tpu.memory_space<vmem>>, vector<1x32xf32>
    %11 = vector.broadcast %10 : vector<1x32xf32> to vector<16x32xf32>
    %12 = arith.addf %9, %11 : vector<16x32xf32>
    %cst_11 = arith.constant 0.000000e+00 : f32
    %13 = vector.broadcast %cst_11 : f32 to vector<16x32xf32>
    %14 = arith.maximumf %12, %13 : vector<16x32xf32>
    %c0_12 = arith.constant 0 : index
    %c0_13 = arith.constant 0 : index
    %15 = vector.load %arg6[%c0_12, %c0_13] : memref<32x128xf32, #tpu.memory_space<vmem>>, vector<32x128xf32>
    %cst_14 = arith.constant dense<0.000000e+00> : vector<16x128xf32>
    %16 = tpu.matmul %14, %15, %cst_14 {dimension_numbers = #tpu.dot_dimension_numbers<[1], [0], [0], [1], [0, 0, 1, 1], [], []>} : vector<16x32xf32>, vector<32x128xf32>, vector<16x128xf32> -> vector<16x128xf32>
    %c0_15 = arith.constant 0 : index
    %c0_16 = arith.constant 0 : index
    %17 = vector.load %arg7[%c0_15, %c0_16] : memref<1x128xf32, #tpu.memory_space<vmem>>, vector<1x128xf32>
    %18 = vector.broadcast %17 : vector<1x128xf32> to vector<16x128xf32>
    %19 = arith.addf %16, %18 : vector<16x128xf32>
    %20 = tpu.iota {dimensions = array<i32: 1>} : vector<16x128xi32>
    %c5_i32 = arith.constant 5 : i32
    %21 = vector.broadcast %c5_i32 : i32 to vector<16x128xi32>
    %22 = arith.cmpi slt, %20, %21 : vector<16x128xi32>
    %cst_17 = arith.constant 0xFF800000 : f32
    %23 = vector.broadcast %cst_17 : f32 to vector<16x128xf32>
    %24 = arith.select %22, %19, %23 : vector<16x128xi1>, vector<16x128xf32>
    %cst_18 = arith.constant dense<0xFF800000> : vector<16xf32>
    %25 = vector.multi_reduction <maximumf>, %24, %cst_18 [1] : vector<16x128xf32> to vector<16xf32>
    %26 = vector.shape_cast %25 : vector<16xf32> to vector<16x1xf32>
    %27 = vector.shape_cast %26 : vector<16x1xf32> to vector<16x1xf32>
    %28 = vector.broadcast %27 : vector<16x1xf32> to vector<16x128xf32>
    %29 = arith.select %22, %19, %28 : vector<16x128xi1>, vector<16x128xf32>
    %30 = vector.broadcast %26 : vector<16x1xf32> to vector<16x128xf32>
    %31 = arith.subf %29, %30 : vector<16x128xf32>
    %32 = math.exp %31 : vector<16x128xf32>
    %cst_19 = arith.constant 0.000000e+00 : f32
    %33 = vector.broadcast %cst_19 : f32 to vector<16x128xf32>
    %34 = arith.select %22, %32, %33 : vector<16x128xi1>, vector<16x128xf32>
    %cst_20 = arith.constant dense<0.000000e+00> : vector<16xf32>
    %35 = vector.multi_reduction <add>, %34, %cst_20 [1] : vector<16x128xf32> to vector<16xf32>
    %36 = vector.shape_cast %35 : vector<16xf32> to vector<16x1xf32>
    %37 = vector.broadcast %36 : vector<16x1xf32> to vector<16x128xf32>
    %38 = arith.divf %34, %37 : vector<16x128xf32>
    %39 = arith.select %22, %38, %19 : vector<16x128xi1>, vector<16x128xf32>
    %c0_21 = arith.constant 0 : index
    %c0_22 = arith.constant 0 : index
    %40 = vector.load %arg8[%c0_21, %c0_22] : memref<16x128xf32, #tpu.memory_space<vmem>>, vector<16x128xf32>
    tpu.vector_store %arg8[%c0_21, %c0_22], %39 {strides = array<i32>} : memref<16x128xf32, #tpu.memory_space<vmem>>, vector<16x128xf32>,
    return
  }
  func.func @transform_0(%arg0: i32) -> (i32, i32) {
    %c0_i32 = arith.constant 0 : i32
    %c0_i32_0 = arith.constant 0 : i32
    return %arg0, %c0_i32 : i32, i32
  }
  func.func @transform_1(%arg0: i32) -> (i32, i32) {
    %c0_i32 = arith.constant 0 : i32
    %c0_i32_0 = arith.constant 0 : i32
    %c0_i32_1 = arith.constant 0 : i32
    return %c0_i32, %c0_i32_0 : i32, i32
  }
  func.func @transform_2(%arg0: i32) -> (i32, i32) {
    %c0_i32 = arith.constant 0 : i32
    %c0_i32_0 = arith.constant 0 : i32
    %c0_i32_1 = arith.constant 0 : i32
    return %c0_i32, %c0_i32_0 : i32, i32
  }
  func.func @transform_3(%arg0: i32) -> (i32, i32) {
    %c0_i32 = arith.constant 0 : i32
    %c0_i32_0 = arith.constant 0 : i32
    %c0_i32_1 = arith.constant 0 : i32
    return %c0_i32, %c0_i32_0 : i32, i32
  }
  func.func @transform_4(%arg0: i32) -> (i32, i32) {
    %c0_i32 = arith.constant 0 : i32
    %c0_i32_0 = arith.constant 0 : i32
    %c0_i32_1 = arith.constant 0 : i32
    return %c0_i32, %c0_i32_0 : i32, i32
  }
  func.func @transform_5(%arg0: i32) -> (i32, i32) {
    %c0_i32 = arith.constant 0 : i32
    %c0_i32_0 = arith.constant 0 : i32
    %c0_i32_1 = arith.constant 0 : i32
    return %c0_i32, %c0_i32_0 : i32, i32
  }
  func.func @transform_6(%arg0: i32) -> (i32, i32) {
    %c0_i32 = arith.constant 0 : i32
    %c0_i32_0 = arith.constant 0 : i32
    %c0_i32_1 = arith.constant 0 : i32
    return %c0_i32, %c0_i32_0 : i32, i32
  }
  func.func @transform_7(%arg0: i32) -> (i32, i32) {
    %c0_i32 = arith.constant 0 : i32
    %c0_i32_0 = arith.constant 0 : i32
    return %arg0, %c0_i32 : i32, i32
  }
}

</mosaic_0001>

<bundles_post_ra>
// kernel: forward.1
= control target key start
LH: loop header
LB: loop body
LE: loop exit
PB: predicated region body
PF: predicated region fallthrough
CT: control target
= control target key end

     0   :  { %s609_s24 = smov 0   ;;  %s703_s0 = inlined_call_operand.vmem [shape: f32[64,16], index: 0, kind: input, shape index: {}]   ;;  %s704_s1 = inlined_call_operand.vmem [shape: f32[16,64], index: 1, kind: input, shape index: {}]   ;;  %s705_s2 = inlined_call_operand.vmem [shape: f32[1,64], index: 2, kind: input, shape index: {}]   ;;  %s706_s3 = inlined_call_operand.vmem [shape: f32[64,32], index: 3, kind: input, shape index: {}]   ;;  %s707_s4 = inlined_call_operand.vmem [shape: f32[1,32], index: 4, kind: input, shape index: {}]   ;;  %s708_s5 = inlined_call_operand.vmem [shape: f32[32,128], index: 5, kind: input, shape index: {}]   ;;  %s709_s6 = inlined_call_operand.vmem [shape: f32[1,128], index: 6, kind: input, shape index: {}]   ;;  %s710_s7 = inlined_call_operand.vmem [shape: f32[64,128], index: 7, kind: output, shape index: {}]  }
   0x1 LB: > { %s517_s25 = sadd.s32 4294967295, %s567_s24   ;;  %p521_p0 = scmp.ge.s32.totalorder %s567_s24, 1  ;;  %s567_s24 = sphi %s609_s24, %s17_s24  }
   0x2   : > { %p238_p1 = scmp.lt.s32.totalorder %s567_s24, 5 }
   0x4   : > { %p239_p2 = pnand %p521_p0, %p238_p1 }
   0x5   : > { %s522_s30 = sshll.u32 (!%p239_p2), %s517_s25, 1 }
   0x6   : > { %242 = sbr.rel (%p239_p2) target bundleno = 690 (0x2b2), region = 48  ;;  %p271_p3 = scmp.lt.s32.totalorder (!%p239_p2), %s522_s30, 7 }
   0xb   : > { %v285_v0 = vld [vmem:[%s704_s1 + $0x8] sm:$0xff]  ;;  %v284_v1 = vld [vmem:[%s704_s1] sm:$0xff]  ;;  %v329_v2 = vld [vmem:[%s706_s3 + $0x38] sm:$0xff]  ;;  %s712_s30 = smov (!%p271_p3, %s522_s30), 7  ;;  %vm290_vm0 = vcmask 130048   ;;  %vm334_vm1 = vcmask 523264   ;;  %v404_v30 = vlaneseq }
   0xc   : > { %311 = vmatpush.msra.mxu0 %v285_v0  ;;  %349 = vmatpush.msra.mxu1 %v329_v2  ;;  %v328_v3 = vld [vmem:[%s706_s3 + $0x30] sm:$0xff]  ;;  %v327_v4 = vld [vmem:[%s706_s3 + $0x28] sm:$0xff]  ;;  %v326_v5 = vld [vmem:[%s706_s3 + $0x20] sm:$0xff]  ;;  %s523_s16 = sshll.u32 %s712_s30, 3  ;;  %vm374_vm2 = vcmask 261120  }
   0xd   : > { %534 = vmatpush.msra.mxu3 %v329_v2  ;;  %s274_s19 = scalar_lea.vmem %s703_s0, %s523_s16  ;;  %v325_v6 = vld [vmem:[%s706_s3 + $0x18] sm:$0xff]  ;;  %v324_v9 = vld [vmem:[%s706_s3 + $0x10] sm:$0xff]  ;;  %v323_v10 = vld [vmem:[%s706_s3 + $0x8] sm:$0xff]  ;;  %v673_v31 = vand.u32 127, %v404_v30  ;;  %s280_s25 = scalar_lea.vmem %s710_s7, %s523_s16 }
   0xe   : > { %312 = vmatpush.msra.mxu0 %v284_v1  ;;  %350 = vmatpush.msra.mxu1 %v328_v3  ;;  %v282_v7 = vld [vmem:[%s274_s19] sm:$0xff]  ;;  %v283_v8 = vld [vmem:[%s274_s19 + $0x8] sm:$0xff]  ;;  %v369_v12 = vld [vmem:[%s708_s5 + $0x18] sm:$0xff] }
   0xf   : > { %535 = vmatpush.msra.mxu3 %v328_v3  ;;  %526 = vmatmul.msk.f32.vlgmr.msra.gmra.mxu0 %vm290_vm0, %v282_v7  ;;  %v322_v11 = vld [vmem:[%s706_s3] sm:$0xff]  ;;  %v368_v20 = vld [vmem:[%s708_s5 + $0x10] sm:$0xff]  ;;  %v367_v21 = vld [vmem:[%s708_s5 + $0x8] sm:$0xff]  ;;  %vm406_vm3 = vcmp.lt.s32.totalorder %v673_v31, 5 }
  0x10   : > { %351 = vmatpush.msra.mxu1 %v327_v4  ;;  %393 = vmatpush.msra.mxu2 %v369_v12  ;;  %v550_v13 = vld [vmem:[%s705_s2] ss:$0 sm:$0xff] }
  0x11   : > { %536 = vmatpush.msra.mxu3 %v327_v4  ;;  %v366_v22 = vld [vmem:[%s708_s5] sm:$0xff] }
  0x12   : > { %352 = vmatpush.msra.mxu1 %v326_v5  ;;  %394 = vmatpush.msra.mxu2 %v368_v20  ;;  %v551_v23 = vld [vmem:[%s707_s4] ss:$0 sm:$0xff] }
  0x13   : > { %537 = vmatpush.msra.mxu3 %v326_v5  ;;  %v552_v32 = vld [vmem:[%s709_s6] ss:$0 sm:$0xff] }
  0x14   : > { %353 = vmatpush.msra.mxu1 %v325_v6  ;;  %395 = vmatpush.msra.mxu2 %v367_v21 }
  0x15   : > { %538 = vmatpush.msra.mxu3 %v325_v6 }
  0x16   : > { %354 = vmatpush.msra.mxu1 %v324_v9  ;;  %396 = vmatpush.msra.mxu2 %v366_v22 }
  0x17   : > { %527 = vmatmul.msk.f32.gmra.mxu0 %vm290_vm0, %v283_v8  ;;  %539 = vmatpush.msra.mxu3 %v324_v9 }
  0x18   : > { %355 = vmatpush.msra.mxu1 %v323_v10 }
  0x19   : > { %540 = vmatpush.msra.mxu3 %v323_v10 }
  0x1a   : > { %356 = vmatpush.msra.mxu1 %v322_v11 }
  0x1b   : > { %541 = vmatpush.msra.mxu3 %v322_v11 }
  0x8c   : > { %v314_v14 = vpop.f32.mrf.mxu0 }
  0x8d   : > { %v315_v15 = vadd.f32 %v550_v13, %v314_v14 }
  0x8f   : > { %v320_v16 = vmax.f32 %v315_v15, 0.0 }
  0x91   : > { %528 = vmatmul.msk.f32.vlgmr.msra.gmra.mxu1 %vm334_vm1, %v320_v16 }
  0x94   : > { %v317_v17 = vpop.f32.mrf.mxu0 }
  0x95   : > { %v318_v18 = vadd.f32 %v550_v13, %v317_v17 }
  0x97   : > { %v321_v19 = vmax.f32 %v318_v18, 0.0 }
  0x99   : > { %529 = vmatmul.msk.f32.vlgmr.msra.gmra.mxu3 %vm334_vm1, %v321_v19 }
 0x10e   : > { %v358_v24 = vpop.f32.mrf.mxu1 }
 0x10f   : > { %v359_v25 = vadd.f32 %v551_v23, %v358_v24 }
 0x111   : > { %v364_v26 = vmax.f32 %v359_v25, 0.0 }
 0x113   : > { %530 = vmatmul.msk.f32.vlgmr.msra.gmra.mxu2 %vm374_vm2, %v364_v26 }
 0x11c   : > { %v361_v27 = vpop.f32.mrf.mxu3 }
 0x11d   : > { %v362_v28 = vadd.f32 %v551_v23, %v361_v27 }
 0x11f   : > { %v365_v29 = vmax.f32 %v362_v28, 0.0 }
 0x121   : > { %531 = vmatmul.msk.f32.gmra.mxu2 %vm374_vm2, %v365_v29 }
 0x196   : > { %v398_v33 = vpop.f32.mrf.mxu2 }
 0x197   : > { %v399_v34 = vadd.f32 %v552_v32, %v398_v33 }
 0x199   : > { %v407_v35 = vsel %vm406_vm3, %v399_v34, -inf }
 0x19a   : > { %409 = vmax.xlane.f32.xlu0 %v407_v35 }
 0x1a4   : > { %v401_v36 = vpop.f32.mrf.mxu2 }
 0x1a5   : > { %v402_v37 = vadd.f32 %v552_v32, %v401_v36 }
 0x1a7   : > { %v408_v38 = vsel %vm406_vm3, %v402_v37, -inf }
 0x1a8   : > { %411 = vmax.xlane.f32.xlu0 %v408_v38 }
 0x20d   : > { %v410_v39 = vpop.xlane.xlu0 %409 }
 0x20e   : > { %v413_v40 = vsel %vm406_vm3, %v399_v34, %v410_v39 }
 0x20f   : > { %v415_v41 = vsub.f32 %v413_v40, %v410_v39 }
 0x211   : > { %v417_v42 = vmul.f32 1.442695, %v415_v41 }
 0x213   : > { %553 = vpow2.f32 %v417_v42 }
 0x219   : > { %v554_v43 = vpop.eup %553 }
 0x21a   : > { %v421_v44 = vsel %vm406_vm3, %v554_v43, 0.0 }
 0x21b   : > { %423 = vadd.xlane.f32.xlu1 %v421_v44  ;;  %v412_v45 = vpop.xlane.xlu0 %411 }
 0x21c   : > { %v414_v46 = vsel %vm406_vm3, %v402_v37, %v412_v45 }
 0x21d   : > { %v416_v47 = vsub.f32 %v414_v46, %v412_v45 }
 0x21f   : > { %v419_v48 = vmul.f32 1.442695, %v416_v47 }
 0x221   : > { %555 = vpow2.f32 %v419_v48 }
 0x227   : > { %v556_v49 = vpop.eup %555 }
 0x228   : > { %v422_v50 = vsel %vm406_vm3, %v556_v49, 0.0 }
 0x229   : > { %425 = vadd.xlane.f32.xlu1 %v422_v50 }
 0x28e   : > { %v424_v51 = vpop.xlane.xlu1 %423 }
 0x28f   : > { %557 = vrcp.f32 %v424_v51  ;;  %v438_v55 = vand.u32 2147483648, %v424_v51  ;;  %v436_v57 = vand.u32 2147483647, %v424_v51  ;;  %vm432_vm5 = vweird.f32 %v424_v51 }
 0x291   : > { %v439_v60 = vor.u32 1.1754944e-38, %v438_v55  ;;  %vm437_vm7 = vcmp.eq.f32.partialorder %v436_v57, 8.507059e+37 }
 0x295   : > { %v558_v52 = vpop.eup %557 }
 0x296   : > { %v428_v53 = vmul.f32 %v558_v52, %v424_v51  ;;  %vm433_vm4 = vweird.f32 %v558_v52 }
 0x297   : > { %vm434_vm6 = vmor %vm432_vm5, %vm433_vm4 }
 0x298   : > { %v429_v54 = vsub.f32 1.0, %v428_v53 }
 0x29a   : > { %v430_v56 = vmul.f32 %v558_v52, %v429_v54 }
 0x29c   : > { %v431_v58 = vadd.f32 %v558_v52, %v430_v56  ;;  %v426_v59 = vpop.xlane.xlu1 %425 }
 0x29d   : > { %559 = vrcp.f32 %v426_v59  ;;  %v453_v4 = vand.u32 2147483648, %v426_v59  ;;  %v451_v6 = vand.u32 2147483647, %v426_v59  ;;  %vm447_vm9 = vweird.f32 %v426_v59 }
 0x29e   : > { %v435_v61 = vsel %vm434_vm6, %v558_v52, %v431_v58 }
 0x29f   : > { %v440_v62 = vsel %vm437_vm7, %v439_v60, %v435_v61  ;;  %v454_v8 = vor.u32 1.1754944e-38, %v453_v4  ;;  %vm452_vm11 = vcmp.eq.f32.partialorder %v451_v6, 8.507059e+37 }
 0x2a0   : > { %v441_v63 = vmul.f32 %v440_v62, %v421_v44 }
 0x2a2   : > { %v457_v0 = vsel %vm406_vm3, %v441_v63, %v399_v34 }
 0x2a3   : > { %v560_v1 = vpop.eup %559  ;;  %459 = vst [vmem:[%s280_s25] sm:$0xff] %v457_v0 }
 0x2a4   : > { %v443_v2 = vmul.f32 %v560_v1, %v426_v59  ;;  %vm448_vm8 = vweird.f32 %v560_v1 }
 0x2a5   : > { %vm449_vm10 = vmor %vm447_vm9, %vm448_vm8 }
 0x2a6   : > { %v444_v3 = vsub.f32 1.0, %v443_v2 }
 0x2a8   : > { %v445_v5 = vmul.f32 %v560_v1, %v444_v3 }
 0x2aa   : > { %v446_v7 = vadd.f32 %v560_v1, %v445_v5 }
 0x2ac   : > { %v450_v9 = vsel %vm449_vm10, %v560_v1, %v446_v7 }
 0x2ad   : > { %v455_v10 = vsel %vm452_vm11, %v454_v8, %v450_v9 }
 0x2ae   : > { %v456_v11 = vmul.f32 %v455_v10, %v422_v50 }
 0x2b0   : > { %v458_v12 = vsel %vm406_vm3, %v456_v11, %v402_v37 }
 0x2b1   : > { %460 = vst [vmem:[%s280_s25 + $0x8] sm:$0xff] %v458_v12 }
 0x2b2 PF: > { %s17_s24 = sadd.s32 1, %s567_s24  }
 0x2b3   : > { %p14_p4 = scmp.ge.s32.totalorder %s17_s24, 6  }
 0x2b5   :  { %16 = sbr.rel (!%p14_p4) target bundleno = 1 (0x1), region = 78 }

</bundles_post_ra>
